<compile_context>
chip_gen: v7x
topology: tpu7x:2x2x1
jax: 0.10.0
libtpu: 0.0.40
codegen_flags: <defaults>
</compile_context>

<pallas_src>
import functools
import math

import jax
import jax.numpy as jnp
from jax import lax
from jax.experimental import pallas as pl
from jax.experimental.pallas import tpu as pltpu


def _sepconv_kernel(x_ref, wtap_ref, wmm_ref, o_ref, acc_ref, *,
                    taps, TH, WOCs, r_tile, g_cs, full_image):
    """One (batch, row-band) step of the fused depthwise + pointwise conv.

    x_ref    : (1, rows, Wk*Cs)  lane-dense padded input slab          (VMEM)
    wtap_ref : (K*K, WO*Cs)      per-tap depthwise weight rows         (VMEM)
    wmm_ref  : (g*Cs, g*O)       block-diagonal pointwise weight       (VMEM)
    o_ref    : (r_tile, g*O)     packed, lane-dense output tile        (VMEM)
    acc_ref  : (TH, WO*Cs)       depthwise accumulator scratch         (VMEM)
    """
    if full_image:
        b = pl.program_id(1)
        row0 = b * TH
        if TH % 8 == 0:
            row0 = pl.multiple_of(row0, 8)
    else:
        row0 = 0

    # Depthwise: K*K shifted multiply-accumulates on the VPU (no im2col,
    # no masked narrow stores -- the accumulator is full lane width).
    for t, (dr, dl) in enumerate(taps):
        patch = x_ref[0, pl.ds(row0 + dr, TH), pl.ds(dl, WOCs)]      # (TH, WO*Cs)
        contrib = patch * wtap_ref[pl.ds(t, 1), :]                   # bcast over rows
        if t == 0:
            acc_ref[...] = contrib
        else:
            acc_ref[...] += contrib

    # Pointwise: one MXU matmul.  The block-diagonal weight packs g output
    # pixels per row, so the store is lane-dense with zero padding waste.
    lhs = acc_ref[...].reshape(r_tile, g_cs)
    o_ref[...] = jnp.dot(lhs, wmm_ref[...],
                         preferred_element_type=jnp.float32).astype(o_ref.dtype)


def separable_conv2d(x_nchw, w_dw, w_pw, *, stride=1, padding=0, dilation=1):
    """x_nchw: (N,C,H,W); w_dw: (C,1,K,K); w_pw: (O,C,1,1).  Returns (N,O,HO,WO)."""
    N, C, H, W = x_nchw.shape
    O = w_pw.shape[0]
    K = w_dw.shape[-1]
    s, d, p = stride, dilation, padding
    dt = x_nchw.dtype

    HO = (H + 2 * p - d * (K - 1) - 1) // s + 1
    WO = (W + 2 * p - d * (K - 1) - 1) // s + 1
    Cs = s * s * C                      # channels per space-to-depth pixel (== C if s == 1)
    T = K * K

    # ---- per-tap (row-offset, lane-offset) in the space-to-depth domain ------
    taps, max_qh, wk_min = [], 0, WO
    for kh in range(K):
        for kw in range(K):
            ah, aw = kh * d, kw * d
            qh, rh = ah // s, ah % s
            qw, rw = aw // s, aw % s
            sub = rh * s + rw
            taps.append((qh, qw * Cs + sub * C))
            max_qh = max(max_qh, qh)
            wk_min = max(wk_min, qw + WO + (1 if sub else 0))

    # ---- output packing factor g (g*O lanes per packed output row) -----------
    g = 1 if O >= 128 else max(1, 128 // O)

    def _req(gv):                       # TH granularity so out-tile rows % 8 == 0
        m = 8 * gv
        return m // math.gcd(WO, m)

    req = _req(g)
    while g > 1 and req > max(8, -(-HO // 8) * 8):
        g //= 2
        req = _req(g)

    # ---- band size: ~4096 out px/step (2k v5e / 4k v6e / 8k v7x target), -----
    # ---- >= 4 grid steps for v7x's two TensorCores, and a VMEM budget. -------
    TARGET_PX = 4096
    TH = max(req, (min(HO, max(1, TARGET_PX // max(WO, 1))) // req) * req)
    while TH > req and N * (-(-HO // TH)) < 4:
        TH = max(req, ((TH // 2) // req) * req)

    def _vmem_est(th, full_img):
        nb = -(-HO // th)
        rows = (nb * th + max_qh) if full_img else (th + max_qh)
        return 4 * (2 * rows * wk_min * Cs          # input block (double-buffered)
                    + 2 * g * Cs * g * O            # block-diag pointwise weight
                    + 2 * T * WO * Cs               # per-tap weight rows
                    + th * WO * Cs                  # depthwise accumulator
                    + 2 * th * WO * O)              # output tile

    BUDGET = 30 * 2**20                              # comfortably fits v7x's 64 MiB VMEM
    while TH > req and _vmem_est(TH, True) > BUDGET:
        TH = max(req, ((TH // 2) // req) * req)
    full_image = _vmem_est(TH, True) <= BUDGET
    if not full_image:
        while TH > req and _vmem_est(TH, False) > BUDGET:
            TH = max(req, ((TH // 2) // req) * req)

    nbands = -(-HO // TH)
    HO_pad = nbands * TH
    Hk, Wk = HO_pad + max_qh, wk_min

    # ---- wrapper layout plumbing: NCHW->NHWC, zero pad, space-to-depth -------
    x_nhwc = jnp.transpose(x_nchw, (0, 2, 3, 1))
    Hp, Wp = Hk * s, Wk * s
    xp = jnp.pad(x_nhwc, ((0, 0),
                          (p, max(0, Hp - H - p)),
                          (p, max(0, Wp - W - p)),
                          (0, 0)))[:, :Hp, :Wp, :]
    xs = (xp.reshape(N, Hk, s, Wk, s, C)
            .transpose(0, 1, 3, 2, 4, 5)
            .reshape(N, Hk, Wk * Cs))               # identity when stride == 1

    # ---- weights --------------------------------------------------------------
    wd = jnp.transpose(w_dw[:, 0, :, :], (1, 2, 0)).reshape(T, C).astype(dt)  # (K*K, C)
    wtap = jnp.zeros((T, Cs), dt).at[:, :C].set(wd)
    wtap = jnp.tile(wtap, (1, WO))                                             # (T, WO*Cs)

    wp = jnp.transpose(w_pw[:, :, 0, 0], (1, 0)).astype(dt)                    # (C, O)
    wp_ext = jnp.zeros((Cs, O), dt).at[:C, :].set(wp)
    wmm = (jnp.eye(g, dtype=dt)[:, None, :, None]
           * wp_ext[None, :, None, :]).reshape(g * Cs, g * O)                  # block-diag
    # TODO(synk): for production channel counts, cast xs/wtap/wmm to bf16 (f32 accumulate)
    # and add an O-axis "parallel" grid dim (256-wide tiles) for O >= 256.

    # ---- pallas_call ----------------------------------------------------------
    r_tile = TH * WO // g
    Lout = g * O
    NB = N * nbands
    WOCs = WO * Cs

    if full_image:
        x_in = xs
        x_spec = pl.BlockSpec((1, Hk, Wk * Cs), lambda n, b: (n, 0, 0))
    else:
        # TODO(synk): replace this halo-duplicating stack with an in-kernel
        # pl.ANY + pltpu.make_async_copy double-buffered band fetch.
        TH_in = TH + max_qh
        x_in = jnp.concatenate(
            [xs[:, b * TH:b * TH + TH_in, :][:, None] for b in range(nbands)],
            axis=1).reshape(NB, TH_in, Wk * Cs)
        x_spec = pl.BlockSpec((1, TH_in, Wk * Cs),
                              lambda n, b: (n * nbands + b, 0, 0))

    kernel = functools.partial(
        _sepconv_kernel, taps=tuple(taps), TH=TH, WOCs=WOCs,
        r_tile=r_tile, g_cs=g * Cs, full_image=full_image)

    out_slab = pl.pallas_call(
        kernel,
        out_shape=jax.ShapeDtypeStruct((NB * r_tile, Lout), dt),
        grid_spec=pltpu.PrefetchScalarGridSpec(
            num_scalar_prefetch=0,
            grid=(N, nbands),
            in_specs=[x_spec,
                      pl.BlockSpec((T, WOCs), lambda n, b: (0, 0)),
                      pl.BlockSpec((g * Cs, Lout), lambda n, b: (0, 0))],
            out_specs=pl.BlockSpec((r_tile, Lout),
                                   lambda n, b: (n * nbands + b, 0)),
            scratch_shapes=[pltpu.VMEM((TH, WOCs), jnp.float32)],
        ),
        compiler_params=pltpu.CompilerParams(
            dimension_semantics=("parallel", "parallel"),   # both axes shard on v7x
            vmem_limit_bytes=40 * 1024 * 1024),             # safe on v5e/v6e/v7x
    )(x_in, wtap, wmm)

    # ---- epilogue: free row-major reshapes + the NCHW transpose the module needs
    out = out_slab.reshape(N, HO_pad, WO, O)[:, :HO]         # (N, HO, WO, O)
    # TODO(synk): if the consumer accepts NHWC, return `out` here and skip the transpose.
    return jnp.transpose(out, (0, 3, 1, 2))                  # (N, O, HO, WO)


def _reference(x_nchw, w_dw, w_pw, *, stride, padding, dilation):
    """Pure-JAX reference using lax.conv_general_dilated (matches nn.Conv2d)."""
    C = x_nchw.shape[1]
    y = lax.conv_general_dilated(
        x_nchw, w_dw,
        window_strides=(stride, stride),
        padding=((padding, padding), (padding, padding)),
        rhs_dilation=(dilation, dilation),
        dimension_numbers=("NCHW", "OIHW", "NCHW"),
        feature_group_count=C)
    return lax.conv_general_dilated(
        y, w_pw, window_strides=(1, 1), padding="VALID",
        dimension_numbers=("NCHW", "OIHW", "NCHW"))


if __name__ == "__main__":
    key = jax.random.PRNGKey(0)

    # --- primary check: SeparableConv2d(4, 8, kernel_size=3, stride=1, padding=1) ---
    N, C_IN, H, W = 2, 4, 16, 16
    C_OUT, K = 8, 3
    kx, kd, kp, kx2 = jax.random.split(key, 4)
    x = jax.random.normal(kx, (N, C_IN, H, W), dtype=jnp.float32)
    w_dw = jax.random.normal(kd, (C_IN, 1, K, K), dtype=jnp.float32) * 0.1
    w_pw = jax.random.normal(kp, (C_OUT, C_IN, 1, 1), dtype=jnp.float32) * 0.1

    out = separable_conv2d(x, w_dw, w_pw, stride=1, padding=1, dilation=1)
    out = jax.block_until_ready(out)
    ref = _reference(x, w_dw, w_pw, stride=1, padding=1, dilation=1)
    assert out.shape == (N, C_OUT, H, W), out.shape
    assert jnp.allclose(out, ref, atol=1e-4, rtol=1e-4), "mismatch vs JAX reference (s=1)"

    # --- secondary check: stride=2 path (space-to-depth wrapper, same kernel) ---
    x2 = jax.random.normal(kx2, (1, C_IN, H, W), dtype=jnp.float32)
    out2 = separable_conv2d(x2, w_dw, w_pw, stride=2, padding=1, dilation=1)
    out2 = jax.block_until_ready(out2)
    ref2 = _reference(x2, w_dw, w_pw, stride=2, padding=1, dilation=1)
    assert out2.shape == ref2.shape, (out2.shape, ref2.shape)
    assert jnp.allclose(out2, ref2, atol=1e-4, rtol=1e-4), "mismatch vs JAX reference (s=2)"

    print("KERNEL_OK")
</pallas_src>

<mosaic_0001>
module attributes {stable_mosaic.version = 11 : i64} {
  func.func @_sepconv_kernel(%arg0: i32, %arg1: i32, %arg2: memref<1x18x72xf32, #tpu.memory_space<vmem>>, %arg3: memref<9x64xf32, #tpu.memory_space<vmem>>, %arg4: memref<64x128xf32, #tpu.memory_space<vmem>>, %arg5: memref<8x128xf32, #tpu.memory_space<vmem>>, %arg6: memref<8x64xf32, #tpu.memory_space<vmem>>) attributes {dimension_semantics = [#tpu.dimension_semantics<parallel>, #tpu.dimension_semantics<parallel>], iteration_bounds = array<i64: 2, 2>, scalar_prefetch = 0 : i64, scratch_operands = 1 : i64, tpu.core_type = #tpu.core_type<tc>, window_params = [{transform_indices = @transform_0, window_bounds = array<i64: 1, 18, 72>}, {pipeline_mode = #tpu.pipeline_mode<synchronous>, transform_indices = @transform_1, window_bounds = array<i64: 9, 64>}, {pipeline_mode = #tpu.pipeline_mode<synchronous>, transform_indices = @transform_2, window_bounds = array<i64: 64, 128>}, {transform_indices = @transform_3, window_bounds = array<i64: 8, 128>}]} {
    %c8_i32 = arith.constant 8 : i32
    %0 = arith.muli %arg1, %c8_i32 : i32
    %1 = tpu.assume_multiple %0, 8 : i32
    %c0_i32 = arith.constant 0 : i32
    %2 = arith.addi %1, %c0_i32 : i32
    %c0 = arith.constant 0 : index
    %3 = arith.index_cast %2 : i32 to index
    %c0_0 = arith.constant 0 : index
    %4 = vector.load %arg2[%c0, %3, %c0_0] : memref<1x18x72xf32, #tpu.memory_space<vmem>>, vector<1x8x64xf32>
    %5 = vector.shape_cast %4 : vector<1x8x64xf32> to vector<8x64xf32>
    %c0_1 = arith.constant 0 : index
    %c0_2 = arith.constant 0 : index
    %6 = vector.load %arg3[%c0_1, %c0_2] : memref<9x64xf32, #tpu.memory_space<vmem>>, vector<1x64xf32>
    %7 = vector.broadcast %6 : vector<1x64xf32> to vector<8x64xf32>
    %8 = arith.mulf %5, %7 : vector<8x64xf32>
    %c0_3 = arith.constant 0 : index
    %c0_4 = arith.constant 0 : index
    %9 = vector.load %arg6[%c0_3, %c0_4] : memref<8x64xf32, #tpu.memory_space<vmem>>, vector<8x64xf32>
    tpu.vector_store %arg6[%c0_3, %c0_4], %8 {strides = array<i32>} : memref<8x64xf32, #tpu.memory_space<vmem>>, vector<8x64xf32>,
    %c0_i32_5 = arith.constant 0 : i32
    %10 = arith.addi %1, %c0_i32_5 : i32
    %c0_6 = arith.constant 0 : index
    %11 = arith.index_cast %10 : i32 to index
    %c4 = arith.constant 4 : index
    %12 = vector.load %arg2[%c0_6, %11, %c4] : memref<1x18x72xf32, #tpu.memory_space<vmem>>, vector<1x8x64xf32>
    %13 = vector.shape_cast %12 : vector<1x8x64xf32> to vector<8x64xf32>
    %c1 = arith.constant 1 : index
    %c0_7 = arith.constant 0 : index
    %14 = vector.load %arg3[%c1, %c0_7] : memref<9x64xf32, #tpu.memory_space<vmem>>, vector<1x64xf32>
    %15 = vector.broadcast %14 : vector<1x64xf32> to vector<8x64xf32>
    %16 = arith.mulf %13, %15 : vector<8x64xf32>
    %c0_8 = arith.constant 0 : index
    %c0_9 = arith.constant 0 : index
    %17 = vector.load %arg6[%c0_8, %c0_9] : memref<8x64xf32, #tpu.memory_space<vmem>>, vector<8x64xf32>
    %18 = arith.addf %17, %16 : vector<8x64xf32>
    %c0_10 = arith.constant 0 : index
    %c0_11 = arith.constant 0 : index
    %19 = vector.load %arg6[%c0_10, %c0_11] : memref<8x64xf32, #tpu.memory_space<vmem>>, vector<8x64xf32>
    tpu.vector_store %arg6[%c0_10, %c0_11], %18 {strides = array<i32>} : memref<8x64xf32, #tpu.memory_space<vmem>>, vector<8x64xf32>,
    %c0_i32_12 = arith.constant 0 : i32
    %20 = arith.addi %1, %c0_i32_12 : i32
    %c0_13 = arith.constant 0 : index
    %21 = arith.index_cast %20 : i32 to index
    %c8 = arith.constant 8 : index
    %22 = vector.load %arg2[%c0_13, %21, %c8] : memref<1x18x72xf32, #tpu.memory_space<vmem>>, vector<1x8x64xf32>
    %23 = vector.shape_cast %22 : vector<1x8x64xf32> to vector<8x64xf32>
    %c2 = arith.constant 2 : index
    %c0_14 = arith.constant 0 : index
    %24 = vector.load %arg3[%c2, %c0_14] : memref<9x64xf32, #tpu.memory_space<vmem>>, vector<1x64xf32>
    %25 = vector.broadcast %24 : vector<1x64xf32> to vector<8x64xf32>
    %26 = arith.mulf %23, %25 : vector<8x64xf32>
    %c0_15 = arith.constant 0 : index
    %c0_16 = arith.constant 0 : index
    %27 = vector.load %arg6[%c0_15, %c0_16] : memref<8x64xf32, #tpu.memory_space<vmem>>, vector<8x64xf32>
    %28 = arith.addf %27, %26 : vector<8x64xf32>
    %c0_17 = arith.constant 0 : index
    %c0_18 = arith.constant 0 : index
    %29 = vector.load %arg6[%c0_17, %c0_18] : memref<8x64xf32, #tpu.memory_space<vmem>>, vector<8x64xf32>
    tpu.vector_store %arg6[%c0_17, %c0_18], %28 {strides = array<i32>} : memref<8x64xf32, #tpu.memory_space<vmem>>, vector<8x64xf32>,
    %c1_i32 = arith.constant 1 : i32
    %30 = arith.addi %1, %c1_i32 : i32
    %c0_19 = arith.constant 0 : index
    %31 = arith.index_cast %30 : i32 to index
    %c0_20 = arith.constant 0 : index
    %32 = vector.load %arg2[%c0_19, %31, %c0_20] : memref<1x18x72xf32, #tpu.memory_space<vmem>>, vector<1x8x64xf32>
    %33 = vector.shape_cast %32 : vector<1x8x64xf32> to vector<8x64xf32>
    %c3 = arith.constant 3 : index
    %c0_21 = arith.constant 0 : index
    %34 = vector.load %arg3[%c3, %c0_21] : memref<9x64xf32, #tpu.memory_space<vmem>>, vector<1x64xf32>
    %35 = vector.broadcast %34 : vector<1x64xf32> to vector<8x64xf32>
    %36 = arith.mulf %33, %35 : vector<8x64xf32>
    %c0_22 = arith.constant 0 : index
    %c0_23 = arith.constant 0 : index
    %37 = vector.load %arg6[%c0_22, %c0_23] : memref<8x64xf32, #tpu.memory_space<vmem>>, vector<8x64xf32>
    %38 = arith.addf %37, %36 : vector<8x64xf32>
    %c0_24 = arith.constant 0 : index
    %c0_25 = arith.constant 0 : index
    %39 = vector.load %arg6[%c0_24, %c0_25] : memref<8x64xf32, #tpu.memory_space<vmem>>, vector<8x64xf32>
    tpu.vector_store %arg6[%c0_24, %c0_25], %38 {strides = array<i32>} : memref<8x64xf32, #tpu.memory_space<vmem>>, vector<8x64xf32>,
    %c1_i32_26 = arith.constant 1 : i32
    %40 = arith.addi %1, %c1_i32_26 : i32
    %c0_27 = arith.constant 0 : index
    %41 = arith.index_cast %40 : i32 to index
    %c4_28 = arith.constant 4 : index
    %42 = vector.load %arg2[%c0_27, %41, %c4_28] : memref<1x18x72xf32, #tpu.memory_space<vmem>>, vector<1x8x64xf32>
    %43 = vector.shape_cast %42 : vector<1x8x64xf32> to vector<8x64xf32>
    %c4_29 = arith.constant 4 : index
    %c0_30 = arith.constant 0 : index
    %44 = vector.load %arg3[%c4_29, %c0_30] : memref<9x64xf32, #tpu.memory_space<vmem>>, vector<1x64xf32>
    %45 = vector.broadcast %44 : vector<1x64xf32> to vector<8x64xf32>
    %46 = arith.mulf %43, %45 : vector<8x64xf32>
    %c0_31 = arith.constant 0 : index
    %c0_32 = arith.constant 0 : index
    %47 = vector.load %arg6[%c0_31, %c0_32] : memref<8x64xf32, #tpu.memory_space<vmem>>, vector<8x64xf32>
    %48 = arith.addf %47, %46 : vector<8x64xf32>
    %c0_33 = arith.constant 0 : index
    %c0_34 = arith.constant 0 : index
    %49 = vector.load %arg6[%c0_33, %c0_34] : memref<8x64xf32, #tpu.memory_space<vmem>>, vector<8x64xf32>
    tpu.vector_store %arg6[%c0_33, %c0_34], %48 {strides = array<i32>} : memref<8x64xf32, #tpu.memory_space<vmem>>, vector<8x64xf32>,
    %c1_i32_35 = arith.constant 1 : i32
    %50 = arith.addi %1, %c1_i32_35 : i32
    %c0_36 = arith.constant 0 : index
    %51 = arith.index_cast %50 : i32 to index
    %c8_37 = arith.constant 8 : index
    %52 = vector.load %arg2[%c0_36, %51, %c8_37] : memref<1x18x72xf32, #tpu.memory_space<vmem>>, vector<1x8x64xf32>
    %53 = vector.shape_cast %52 : vector<1x8x64xf32> to vector<8x64xf32>
    %c5 = arith.constant 5 : index
    %c0_38 = arith.constant 0 : index
    %54 = vector.load %arg3[%c5, %c0_38] : memref<9x64xf32, #tpu.memory_space<vmem>>, vector<1x64xf32>
    %55 = vector.broadcast %54 : vector<1x64xf32> to vector<8x64xf32>
    %56 = arith.mulf %53, %55 : vector<8x64xf32>
    %c0_39 = arith.constant 0 : index
    %c0_40 = arith.constant 0 : index
    %57 = vector.load %arg6[%c0_39, %c0_40] : memref<8x64xf32, #tpu.memory_space<vmem>>, vector<8x64xf32>
    %58 = arith.addf %57, %56 : vector<8x64xf32>
    %c0_41 = arith.constant 0 : index
    %c0_42 = arith.constant 0 : index
    %59 = vector.load %arg6[%c0_41, %c0_42] : memref<8x64xf32, #tpu.memory_space<vmem>>, vector<8x64xf32>
    tpu.vector_store %arg6[%c0_41, %c0_42], %58 {strides = array<i32>} : memref<8x64xf32, #tpu.memory_space<vmem>>, vector<8x64xf32>,
    %c2_i32 = arith.constant 2 : i32
    %60 = arith.addi %1, %c2_i32 : i32
    %c0_43 = arith.constant 0 : index
    %61 = arith.index_cast %60 : i32 to index
    %c0_44 = arith.constant 0 : index
    %62 = vector.load %arg2[%c0_43, %61, %c0_44] : memref<1x18x72xf32, #tpu.memory_space<vmem>>, vector<1x8x64xf32>
    %63 = vector.shape_cast %62 : vector<1x8x64xf32> to vector<8x64xf32>
    %c6 = arith.constant 6 : index
    %c0_45 = arith.constant 0 : index
    %64 = vector.load %arg3[%c6, %c0_45] : memref<9x64xf32, #tpu.memory_space<vmem>>, vector<1x64xf32>
    %65 = vector.broadcast %64 : vector<1x64xf32> to vector<8x64xf32>
    %66 = arith.mulf %63, %65 : vector<8x64xf32>
    %c0_46 = arith.constant 0 : index
    %c0_47 = arith.constant 0 : index
    %67 = vector.load %arg6[%c0_46, %c0_47] : memref<8x64xf32, #tpu.memory_space<vmem>>, vector<8x64xf32>
    %68 = arith.addf %67, %66 : vector<8x64xf32>
    %c0_48 = arith.constant 0 : index
    %c0_49 = arith.constant 0 : index
    %69 = vector.load %arg6[%c0_48, %c0_49] : memref<8x64xf32, #tpu.memory_space<vmem>>, vector<8x64xf32>
    tpu.vector_store %arg6[%c0_48, %c0_49], %68 {strides = array<i32>} : memref<8x64xf32, #tpu.memory_space<vmem>>, vector<8x64xf32>,
    %c2_i32_50 = arith.constant 2 : i32
    %70 = arith.addi %1, %c2_i32_50 : i32
    %c0_51 = arith.constant 0 : index
    %71 = arith.index_cast %70 : i32 to index
    %c4_52 = arith.constant 4 : index
    %72 = vector.load %arg2[%c0_51, %71, %c4_52] : memref<1x18x72xf32, #tpu.memory_space<vmem>>, vector<1x8x64xf32>
    %73 = vector.shape_cast %72 : vector<1x8x64xf32> to vector<8x64xf32>
    %c7 = arith.constant 7 : index
    %c0_53 = arith.constant 0 : index
    %74 = vector.load %arg3[%c7, %c0_53] : memref<9x64xf32, #tpu.memory_space<vmem>>, vector<1x64xf32>
    %75 = vector.broadcast %74 : vector<1x64xf32> to vector<8x64xf32>
    %76 = arith.mulf %73, %75 : vector<8x64xf32>
    %c0_54 = arith.constant 0 : index
    %c0_55 = arith.constant 0 : index
    %77 = vector.load %arg6[%c0_54, %c0_55] : memref<8x64xf32, #tpu.memory_space<vmem>>, vector<8x64xf32>
    %78 = arith.addf %77, %76 : vector<8x64xf32>
    %c0_56 = arith.constant 0 : index
    %c0_57 = arith.constant 0 : index
    %79 = vector.load %arg6[%c0_56, %c0_57] : memref<8x64xf32, #tpu.memory_space<vmem>>, vector<8x64xf32>
    tpu.vector_store %arg6[%c0_56, %c0_57], %78 {strides = array<i32>} : memref<8x64xf32, #tpu.memory_space<vmem>>, vector<8x64xf32>,
    %c2_i32_58 = arith.constant 2 : i32
    %80 = arith.addi %1, %c2_i32_58 : i32
    %c0_59 = arith.constant 0 : index
    %81 = arith.index_cast %80 : i32 to index
    %c8_60 = arith.constant 8 : index
    %82 = vector.load %arg2[%c0_59, %81, %c8_60] : memref<1x18x72xf32, #tpu.memory_space<vmem>>, vector<1x8x64xf32>
    %83 = vector.shape_cast %82 : vector<1x8x64xf32> to vector<8x64xf32>
    %c8_61 = arith.constant 8 : index
    %c0_62 = arith.constant 0 : index
    %84 = vector.load %arg3[%c8_61, %c0_62] : memref<9x64xf32, #tpu.memory_space<vmem>>, vector<1x64xf32>
    %85 = vector.broadcast %84 : vector<1x64xf32> to vector<8x64xf32>
    %86 = arith.mulf %83, %85 : vector<8x64xf32>
    %c0_63 = arith.constant 0 : index
    %c0_64 = arith.constant 0 : index
    %87 = vector.load %arg6[%c0_63, %c0_64] : memref<8x64xf32, #tpu.memory_space<vmem>>, vector<8x64xf32>
    %88 = arith.addf %87, %86 : vector<8x64xf32>
    %c0_65 = arith.constant 0 : index
    %c0_66 = arith.constant 0 : index
    %89 = vector.load %arg6[%c0_65, %c0_66] : memref<8x64xf32, #tpu.memory_space<vmem>>, vector<8x64xf32>
    tpu.vector_store %arg6[%c0_65, %c0_66], %88 {strides = array<i32>} : memref<8x64xf32, #tpu.memory_space<vmem>>, vector<8x64xf32>,
    %c0_67 = arith.constant 0 : index
    %c0_68 = arith.constant 0 : index
    %90 = vector.load %arg6[%c0_67, %c0_68] : memref<8x64xf32, #tpu.memory_space<vmem>>, vector<8x64xf32>
    %c0_69 = arith.constant 0 : index
    %c0_70 = arith.constant 0 : index
    %91 = vector.load %arg4[%c0_69, %c0_70] : memref<64x128xf32, #tpu.memory_space<vmem>>, vector<64x128xf32>
    %cst = arith.constant dense<0.000000e+00> : vector<8x128xf32>
    %92 = tpu.matmul %90, %91, %cst {dimension_numbers = #tpu.dot_dimension_numbers<[1], [0], [0], [1], [0, 0, 1, 1], [], []>} : vector<8x64xf32>, vector<64x128xf32>, vector<8x128xf32> -> vector<8x128xf32>
    %c0_71 = arith.constant 0 : index
    %c0_72 = arith.constant 0 : index
    %93 = vector.load %arg5[%c0_71, %c0_72] : memref<8x128xf32, #tpu.memory_space<vmem>>, vector<8x128xf32>
    tpu.vector_store %arg5[%c0_71, %c0_72], %92 {strides = array<i32>} : memref<8x128xf32, #tpu.memory_space<vmem>>, vector<8x128xf32>,
    return
  }
  func.func @transform_0(%arg0: i32, %arg1: i32) -> (i32, i32, i32) {
    %c0_i32 = arith.constant 0 : i32
    %c0_i32_0 = arith.constant 0 : i32
    %c0_i32_1 = arith.constant 0 : i32
    return %arg0, %c0_i32, %c0_i32_0 : i32, i32, i32
  }
  func.func @transform_1(%arg0: i32, %arg1: i32) -> (i32, i32) {
    %c0_i32 = arith.constant 0 : i32
    %c0_i32_0 = arith.constant 0 : i32
    %c0_i32_1 = arith.constant 0 : i32
    return %c0_i32, %c0_i32_0 : i32, i32
  }
  func.func @transform_2(%arg0: i32, %arg1: i32) -> (i32, i32) {
    %c0_i32 = arith.constant 0 : i32
    %c0_i32_0 = arith.constant 0 : i32
    %c0_i32_1 = arith.constant 0 : i32
    return %c0_i32, %c0_i32_0 : i32, i32
  }
  func.func @transform_3(%arg0: i32, %arg1: i32) -> (i32, i32) {
    %c2_i32 = arith.constant 2 : i32
    %0 = arith.muli %arg0, %c2_i32 : i32
    %1 = arith.addi %0, %arg1 : i32
    %c0_i32 = arith.constant 0 : i32
    %c0_i32_0 = arith.constant 0 : i32
    return %1, %c0_i32 : i32, i32
  }
}

</mosaic_0001>

<bundles_post_ra>
// kernel: tpu_custom_call.1
= control target key start
LH: loop header
LB: loop body
LE: loop exit
PB: predicated region body
PF: predicated region fallthrough
CT: control target
= control target key end

     0   :  { %8 = vsyncpa [#allocation4], 0  ;;  %s982_s0 = inlined_call_operand.vmem [shape: f32[2,18,72], index: 0, kind: input, shape index: {}]   ;;  %s983_s1 = inlined_call_operand.vmem [shape: f32[9,64], index: 1, kind: input, shape index: {}]   ;;  %s984_s2 = inlined_call_operand.vmem [shape: f32[64,128], index: 2, kind: input, shape index: {}]   ;;  %s985_s3 = inlined_call_operand.hbm [shape: f32[32,128], index: 3, kind: output, shape index: {}]  }
   0x1   :  { %10 = vsyncpa [#allocation4 + $0x1], 0  ;;  %s785_s12 = smov 0   ;;  %s787_s13 = smov 0  }
   0x2   :  { %s789_s14 = smov 0   ;;  %s791_s15 = smov 0  }
   0x3   :  { %s793_s16 = smov 0   ;;  %s795_s17 = smov 0  }
   0x4   :  { %s797_s18 = smov 0   ;;  %s799_s19 = smov 0  }
   0x5 LB: > { %s509_s20 = sadd.s32 4294967295, %s755_s19   ;;  %s25_s21 = sadd.s32 1, %s747_s17  ;;  %s755_s19 = sphi %s799_s19, %s16_s19   ;;  %s751_s18 = sphi %s797_s18, %s997_s18   ;;  %s747_s17 = sphi %s795_s17, %s996_s17   ;;  %s743_s16 = sphi %s793_s16, %s995_s16   ;;  %s739_s15 = sphi %s791_s15, %s994_s15   ;;  %s735_s14 = sphi %s789_s14, %s993_s14   ;;  %s731_s13 = sphi %s787_s13, %s992_s13   ;;  %s727_s12 = sphi %s785_s12, %s991_s12  }
   0x6   : > { %s28_s22 = sadd.s32 1, %s751_s18  ;;  %p26_p0 = scmp.ge.s32.totalorder %s25_s21, 2 }
   0x7   : > { %s511_s23 = sshll.u32 %s751_s18, 1  ;;  %s510_s24 = sadd.s32 4294967294, %s755_s19  }
   0x8   : > { %s101_s25 = sadd.s32 %s747_s17, %s511_s23  ;;  %s999_s21 = smov (%p26_p0, %s25_s21), 0 }
   0x9   : > { %s1001_s22 = smov (!%p26_p0, %s28_s22), %s751_s18  ;;  %p117_p1 = scmp.ne.s32.totalorder %s735_s14, %s731_s13 }
   0xa   : > { %p118_p2 = scmp.eq.s32.totalorder %s509_s20, 3  ;;  %p30_p3 = scmp.ge.s32.totalorder %s1001_s22, 2 }
   0xb   : > { %p123_p4 = scmp.ne.s32.totalorder %s731_s13, %s727_s12  ;;  %p124_p6 = scmp.eq.s32.totalorder %s510_s24, 3 }
   0xc   : > { %p838_p5 = por %p118_p2, %p117_p1  ;;  %s1003_s22 = smov (%p30_p3, %s1001_s22), 0 }
   0xd   : > { %988 = sst [smem:[#allocation6_spill]] %s1003_s22  ;;  %p844_p7 = por %p124_p6, %p123_p4 }
   0xe   : > { %p515_p8 = scmp.ge.s32.totalorder %s755_s19, 1  ;;  %s512_s28 = sshll.u32 %s1003_s22, 1 }
   0xf   : > { %p156_p9 = scmp.lt.s32.totalorder %s755_s19, 5  ;;  %s103_s29 = sadd.s32 %s512_s28, %s999_s21 }
  0x10   : > { %s107_s30 = sadd.s32 1, %s735_s14  ;;  %s104_s4 = ssub.s32 %s101_s25, %s103_s29 }
  0x11   : > { %p157_p10 = pnand %p515_p8, %p156_p9  ;;  %p105_p11 = scmp.eq.s32.totalorder %s104_s4, 0 }
  0x12   : > { %v520_v0 = vld [vmem:[%s983_s1 + $0x1] ss:$0 sm:$0xff] (!%p157_p10)  ;;  %s757_s8 = smov (!%p157_p10), 4   ;;  %v526_v1 = vld [vmem:[%s983_s1 + $0x4] ss:$0 sm:$0xff] (!%p157_p10)  ;;  %s758_s25 = smov (!%p157_p10), 8  }
  0x13   : > { %s854_s5 = scalar_select %p105_p11, %s735_s14, %s107_s30  }
  0x14   : > { %160 = sbr.rel (%p157_p10) target bundleno = 558 (0x22e), region = 32  ;;  %205 = vrot.lane.b32.xlu0 (!%p157_p10), %v520_v0, %s757_s8  ;;  %v521_v2 = vld [vmem:[%s983_s1 + $0x2] ss:$0 sm:$0xff] (!%p157_p10)  ;;  %253 = vrot.lane.b32.xlu1 (!%p157_p10), %v526_v1, %s757_s8  ;;  %v528_v3 = vld [vmem:[%s983_s1 + $0x5] ss:$0 sm:$0xff] (!%p157_p10)  ;;  %p180_p12 = scmp.lt.s32.totalorder (!%p157_p10), %s743_s16, 1 }
  0x15   : > { %v533_v4 = vld [vmem:[%s983_s1 + $0x7] ss:$0 sm:$0xff] (!%p157_p10)  ;;  %v535_v5 = vld [vmem:[%s983_s1 + $0x8] ss:$0 sm:$0xff] (!%p157_p10)  ;;  %s518_s20 = sshll.u32 (!%p157_p10), %s739_s15, 3  ;;  %vm196_vm0 = vcmask (!%p157_p10), 523264  }
  0x16   : > { %v519_v6 = vld [vmem:[%s983_s1] ss:$0 sm:$0xff] (!%p157_p10)  ;;  %v332_v24 = vld [vmem:[%s984_s2 + $0x8] sm:$0xff] (!%p157_p10)  ;;  %v333_v25 = vld [vmem:[%s984_s2 + $0x10] sm:$0xff] (!%p157_p10)  ;;  %v761_v26 = vmov (!%p157_p10), 0.0|0.0   ;;  %vm762_vm1 = vmmov (!%p157_p10), 0  }
  0x17   : > { %v331_v23 = vld [vmem:[%s984_s2] sm:$0xff] (!%p157_p10)  ;;  %570 = vmatprep.subr.bf16.mxu0 (!%p157_p10), %v761_v26  ;;  %v334_v28 = vld [vmem:[%s984_s2 + $0x18] sm:$0xff] (!%p157_p10)  ;;  %v336_v31 = vld [vmem:[%s984_s2 + $0x28] sm:$0xff] (!%p157_p10)  ;;  %v763_v36 = vmov (!%p157_p10), 0.0   ;;  %s538_s9 = sshll.u32 (!%p157_p10), %s743_s16, 1 }
  0x18   : > { %223 = vrot.lane.b32.xlu0 (!%p157_p10), %v521_v2, %s758_s25  ;;  %271 = vrot.lane.b32.xlu1 (!%p157_p10), %v528_v3, %s758_s25  ;;  %v571_v27 = vpack.c.bf16 (!%p157_p10), %v332_v24, %v331_v23  ;;  %v574_v29 = vpack.c.bf16 (!%p157_p10), %v334_v28, %v333_v25  ;;  %v335_v30 = vld [vmem:[%s984_s2 + $0x20] sm:$0xff] (!%p157_p10)  ;;  %v337_v33 = vld [vmem:[%s984_s2 + $0x30] sm:$0xff] (!%p157_p10)  ;;  %s422_s10 = sadd.s32 (!%p157_p10), %s739_s15, %s538_s9  ;;  %s764_s15 = smov (!%p157_p10), [#allocation3]  }
  0x19   : > { %v577_v32 = vpack.c.bf16 (!%p157_p10), %v336_v31, %v335_v30  ;;  %v338_v34 = vld [vmem:[%s984_s2 + $0x38] sm:$0xff] (!%p157_p10)  ;;  %567 = vmatprep.mubr.msk.f32.mxu0 (!%p157_p10), %vm762_vm1, %v763_v36  ;;  %v524_v43 = vld [vmem:[%s983_s1 + $0x3] ss:$0 sm:$0xff] (!%p157_p10)  ;;  %v531_v53 = vld [vmem:[%s983_s1 + $0x6] ss:$0 sm:$0xff] (!%p157_p10) }
  0x1a   : > { %572 = vmatpush3.bf16.msra.mxu0 (!%p157_p10), %v571_v27  ;;  %v580_v35 = vpack.c.bf16 (!%p157_p10), %v338_v34, %v337_v33 }
  0x1b   : > { %s181_s6 = scalar_select %p180_p12, %s743_s16, 1  ;;  %573 = vmatprep.subr.bf16.mxu0 %v761_v26 }
  0x1c   : > { %301 = vrot.lane.b32.xlu1 %v533_v4, %s757_s8  ;;  %s759_s8 = smov 124   ;;  %s665_s16 = sshll.u32 %s764_s15, 4  ;;  %s666_s16 = int_to_ptr.vmem [resolvable:$false] %s665_s16 }
  0x1d   : > { %s582_s7 = smul.u32 24, %s181_s6  ;;  %s177_s6 = sand.u32 1, %s731_s13  }
  0x1e   : > { %575 = vmatpush3.bf16.msra.mxu0 %v574_v29  ;;  %s414_s22 = scalar_lea.sflag [#allocation4], %s177_s6  ;;  %s667_s29 = scalar_lea.vmem %s666_s16, 256 }
  0x1f   : > { %s184_s11 = scalar_lea.vmem %s982_s0, %s582_s7  ;;  %576 = vmatprep.subr.bf16.mxu0 %v761_v26  ;;  %s516_s7 = sshll.u32 %s177_s6, 3 }
  0x20   : > { %319 = vrot.lane.b32.xlu1 %v535_v5, %s758_s25  ;;  %s188_s23 = scalar_lea.vmem %s184_s11, %s518_s20  ;;  %s760_s25 = smov 120  }
  0x21   : > { %v198_v7 = vld [vmem:[%s188_s23] sm:$0xff]  ;;  %s179_s11 = scalar_lea.vmem [#allocation3], %s516_s7 }
  0x22   : > { %v195_v8 = vmul.f32 %v519_v6, %v198_v7  ;;  %v525_v13 = vld [vmem:[%s188_s23 + $0x1] sm:$0xff]  ;;  %578 = vmatpush3.bf16.msra.mxu0 %v577_v32  ;;  %s429_s20 = sshll.u32 %s179_s11, 4  ;;  %s926_s20 = int_to_ptr.vmem [resolvable:$true] %s429_s20 }
  0x23   : > { %v532_v18 = vld [vmem:[%s188_s23 + $0x2] sm:$0xff]  ;;  %579 = vmatprep.subr.bf16.mxu0 %v761_v26  ;;  %v242_v44 = vmul.f32 %v525_v13, %v524_v43  ;;  %s539_s23 = sshll.u32 %s422_s10, 7  ;;  %s661_s28 = scalar_lea.vmem %s926_s20, 128 }
  0x24   : > { %197 = vst.msk [vmem:[#allocation2] sm:$0xff] %vm196_vm0, %v195_v8  ;;  %v290_v54 = vmul.f32 %v532_v18, %v531_v53  ;;  %p662_p13 = scmp.ne.s32.totalorder %s926_s20, %s661_s28  ;;  %p668_p2 = scmp.lt.s32.totalorder %s926_s20, %s666_s16 }
  0x25   : > { %p669_p3 = scmp.lt.s32.totalorder %s667_s29, %s661_s28 }
  0x26   : > { %581 = vmatpush3.bf16.msra.mxu0 %v580_v35  ;;  %p663_p0 = pnand %p662_p13, %p838_p5 }
  0x27   : > { %p670_p4 = por %p669_p3, %p668_p2 }
  0x28   : > { %p664_p1 = pneg %p663_p0 }
  0x2a   : > { %p671_p6 = pnand %p670_p4, %p664_p1 }
  0x2b   : > { %v209_v37 = vld [vmem:[#allocation2] sm:$0xff] }
  0x86   : > { %v206_v9 = vpop.permute.xlu0 %205  ;;  %v254_v11 = vpop.permute.xlu1 %253 }
  0x87   : > { %v208_v10 = vmul.f32 %v206_v9, %v198_v7  ;;  %v256_v17 = vmul.f32 %v525_v13, %v254_v11 }
  0x89   : > { %211 = vrot.lane.b32.xlu0 %v208_v10, %s759_s8 }
  0x8a   : > { %v224_v12 = vpop.permute.xlu0 %223  ;;  %v272_v15 = vpop.permute.xlu1 %271 }
  0x8b   : > { %v226_v14 = vmul.f32 %v224_v12, %v198_v7  ;;  %v274_v16 = vmul.f32 %v525_v13, %v272_v15 }
  0x8d   : > { %229 = vrot.lane.b32.xlu0 %v226_v14, %s760_s25  ;;  %277 = vrot.lane.b32.xlu1 %v274_v16, %s760_s25 }
  0x8e   : > { %v302_v19 = vpop.permute.xlu1 %301 }
  0x8f   : > { %v304_v20 = vmul.f32 %v532_v18, %v302_v19 }
  0x91   : > { %259 = vrot.lane.b32.xlu0 %v256_v17, %s759_s8 }
  0x92   : > { %v320_v21 = vpop.permute.xlu1 %319 }
  0x93   : > { %v322_v22 = vmul.f32 %v532_v18, %v320_v21 }
  0x95   : > { %307 = vrot.lane.b32.xlu0 %v304_v20, %s759_s8  ;;  %325 = vrot.lane.b32.xlu1 %v322_v22, %s760_s25  ;;  %s931_s25 = scalar_lea.hbm %s985_s3, %s539_s23 }
  0xfb   : > { %v212_v38 = vpop.permute.xlu0 %211 }
  0xfc   : > { %v214_v39 = vadd.f32 %v212_v38, %v209_v37 }
  0xfe   : > { %215 = vst.msk [vmem:[#allocation2] sm:$0xff] %vm196_vm0, %v214_v39 }
  0xff   : > { %v230_v40 = vpop.permute.xlu0 %229  ;;  %v278_v50 = vpop.permute.xlu1 %277 }
 0x103   : > { %v260_v47 = vpop.permute.xlu0 %259 }
 0x105   : > { %v227_v41 = vld [vmem:[#allocation2] sm:$0xff] }
 0x106   : > { %v232_v42 = vadd.f32 %v230_v40, %v227_v41 }
 0x107   : > { %v308_v57 = vpop.permute.xlu0 %307  ;;  %v326_v60 = vpop.permute.xlu1 %325 }
 0x108   : > { %233 = vst.msk [vmem:[#allocation2] sm:$0xff] %vm196_vm0, %v232_v42 }
 0x10f   : > { %v243_v45 = vld [vmem:[#allocation2] sm:$0xff] }
 0x110   : > { %v244_v46 = vadd.f32 %v243_v45, %v242_v44 }
 0x112   : > { %245 = vst.msk [vmem:[#allocation2] sm:$0xff] %vm196_vm0, %v244_v46 }
 0x119   : > { %v257_v48 = vld [vmem:[#allocation2] sm:$0xff] }
 0x11a   : > { %v262_v49 = vadd.f32 %v260_v47, %v257_v48 }
 0x11c   : > { %263 = vst.msk [vmem:[#allocation2] sm:$0xff] %vm196_vm0, %v262_v49 }
 0x123   : > { %v275_v51 = vld [vmem:[#allocation2] sm:$0xff] }
 0x124   : > { %v280_v52 = vadd.f32 %v278_v50, %v275_v51 }
 0x126   : > { %281 = vst.msk [vmem:[#allocation2] sm:$0xff] %vm196_vm0, %v280_v52 }
 0x12d   : > { %v291_v55 = vld [vmem:[#allocation2] sm:$0xff] }
 0x12e   : > { %v292_v56 = vadd.f32 %v291_v55, %v290_v54 }
 0x130   : > { %293 = vst.msk [vmem:[#allocation2] sm:$0xff] %vm196_vm0, %v292_v56 }
 0x137   : > { %v305_v58 = vld [vmem:[#allocation2] sm:$0xff] }
 0x138   : > { %v310_v59 = vadd.f32 %v308_v57, %v305_v58 }
 0x13a   : > { %311 = vst.msk [vmem:[#allocation2] sm:$0xff] %vm196_vm0, %v310_v59 }
 0x141   : > { %v323_v61 = vld [vmem:[#allocation2] sm:$0xff] }
 0x142   : > { %v328_v62 = vadd.f32 %v326_v60, %v323_v61 }
 0x144   : > { %329 = vst.msk [vmem:[#allocation2] sm:$0xff] %vm196_vm0, %v328_v62 }
 0x14b   : > { %v330_v63 = vld [vmem:[#allocation2] sm:$0xff] }
 0x14c   : > { %568 = vmatmul.mubr.msk.f32.vlgmr.msra.gmra.mrb[0].mxu0 %vm196_vm0, %v330_v63 }
 0x21f   : > { %v408_v0 = vpop.f32.mrb[0].mxu0 }
 0x220   : > { %412 = vst [vmem:[%s179_s11] sm:$0xff] %v408_v0  ;;  %v569_v1 = vpop.f32.mrb[1].mxu0 }
 0x221   : > { %674 = shalt.err (!%p671_p6)
}
 0x222   : > { %s675_s30 = scalar_lea.hbm %s931_s25, 128  ;;  %s679_s7 = scalar_lea.hbm %s985_s3, 512 }
 0x223   : > { %p676_p8 = scmp.ne.s32.totalorder %s931_s25, %s675_s30  ;;  %p680_p11 = scmp.lt.u32.totalorder %s931_s25, %s985_s3 }
 0x224   : > { %p681_p12 = scmp.lt.u32.totalorder %s679_s7, %s675_s30  ;;  %p683_p0 = scmp.lt.u32.totalorder %s675_s30, %s931_s25 }
 0x225   : > { %p677_p9 = pnand %p676_p8, %p838_p5 }
 0x226   : > { %p682_p13 = por %p681_p12, %p680_p11 }
 0x227   : > { %p678_p10 = pneg %p677_p9 }
 0x228   : > { %p684_p1 = por %p683_p0, %p682_p13 }
 0x22a   : > { %p685_p2 = pnand %p684_p1, %p678_p10 }
 0x22c   : > { %688 = shalt.err (!%p685_p2)
}
 0x22d   : > { %583 = dma.vmem_to_hbm [thread:$0]  (%p838_p5), %s926_s20, 128, %s931_s25, %s414_s22  }
 0x22e PF: > { %p589_p3 = scmp.ge.s32.totalorder %s755_s19, 2  ;;  %s441_s11 = sand.u32 1, %s727_s12  }
 0x22f   : > { %s442_s23 = scalar_lea.sflag [#allocation4], %s441_s11 }
 0x230   : > { %p586_p4 = pnand %p589_p3, %p844_p7 }
 0x232   : > { %722 = dma.done.wait (!%p586_p4), %s442_s23, 128  }
 0x233   : > { %724 = vsyncadd (!%p586_p4), %s442_s23, 4294967168  ;;  %s16_s19 = sadd.s32 1, %s755_s19   ;;  %s990_s26 = sld [smem:[#allocation6_spill]] }
 0x234   : > { %p13_p6 = scmp.ge.s32.totalorder %s16_s19, 6   ;;  %s991_s12 = smov %s731_s13 }
 0x235   : > { %s992_s13 = smov %s735_s14  ;;  %s993_s14 = smov %s854_s5 }
 0x236   : > { %s994_s15 = smov %s747_s17  ;;  %s995_s16 = smov %s751_s18 }
 0x237   : > { %s996_s17 = smov %s999_s21  ;;  %15 = sbr.rel (!%p13_p6) target bundleno = 5 (0x5), region = 70 }
 0x239   : > { %s997_s18 = smov %s990_s26 }
 0x23e   :  { %447 = vsyncpa [#allocation4], 1 }
 0x23f   :  { %449 = vsyncpa [#allocation4 + $0x1], 1 }

</bundles_post_ra>
